<compile_context>
chip_gen: v7x
topology: tpu7x:2x2x1
jax: 0.10.0
libtpu: 0.0.40
codegen_flags: <defaults>
</compile_context>

<pallas_src>
import functools

import numpy as np
import jax
import jax.numpy as jnp
from jax.experimental import pallas as pl
from jax.experimental.pallas import tpu as pltpu

SHARPNESS = 20.0          # steepness of the smooth |diff| < epsilon gate
_LANES = 128
_SUBLANES = 8


def _round_up(x, m):
    return -(-x // m) * m


def _sublanes_for(dtype):
    # native sublane tile: 8 rows for 4-byte, 16 for 2-byte, 32 for 1-byte dtypes
    return (4 // np.dtype(dtype).itemsize) * 8


def _kappa_kernel(scale_ref, diff_ref, out_ref, *, rho):
    # scale_ref: SMEM (1, 1) f32 holding SHARPNESS * epsilon (hoisted scalar work)
    # diff_ref / out_ref: VMEM (block_rows, 128) tiles
    a = scale_ref[0, 0]
    d = diff_ref[...].astype(jnp.float32)                # free upcast if bf16 I/O
    gate = jax.nn.sigmoid(a - SHARPNESS * jnp.abs(d))    # 2 VPU ops + 1 EUP op
    out_ref[...] = (rho * gate).astype(out_ref.dtype)    # 1 VPU op + store


def prepare_diff_slab(diff_x, dtype=jnp.float32):
    """One-time (init-time) layout: flat (E,) -> lane-dense (rows, 128) slab.

    Mirrors the PyTorch __init__ which precomputes diff_X once; the pad cost is
    paid here, never in the per-forward hot path.
    """
    diff_x = jnp.asarray(diff_x)
    e = diff_x.shape[0]
    sub = _sublanes_for(dtype)
    rows = _round_up(max(1, pl.cdiv(e, _LANES)), sub)
    total = rows * _LANES
    dx = diff_x.astype(dtype)
    if total != e:
        dx = jnp.pad(dx, (0, total - e))
    return dx.reshape(rows, _LANES), e


def kappa_slab(theta, diff_slab, rho, *, block_rows=4096,
               out_dtype=jnp.float32, core_parallel=False):
    """Hot-path forward: Pallas pass over a lane-dense (rows, 128) slab."""
    rows, lanes = diff_slab.shape
    assert lanes == _LANES, "slab must be lane-dense (last dim = 128)"
    in_size = diff_slab.dtype.itemsize
    out_size = np.dtype(out_dtype).itemsize
    sub = max(_sublanes_for(diff_slab.dtype), _sublanes_for(out_dtype))
    if rows % sub:
        raise ValueError(f"slab rows ({rows}) must be a multiple of {sub}")

    # Tile: full slab if it fits in one block, else a large sublane-aligned tile.
    # The final grid block may be partial (rows % block_rows != 0) -- the output
    # write is clipped at the array edge, no padding / slicing needed.
    if block_rows >= rows:
        block_rows = rows
    else:
        block_rows = max(sub, (block_rows // sub) * sub)
    grid = pl.cdiv(rows, block_rows)

    # epsilon = sigmoid(theta)/2 ; hoist the scalar transcendental + scaling out
    # of the kernel and ship the single scalar through SMEM (copied once).
    eps_scaled = jax.nn.sigmoid(jnp.reshape(theta, ())) * (0.5 * SHARPNESS)
    scale2d = eps_scaled.reshape(1, 1).astype(jnp.float32)

    n = rows * _LANES
    cost = pl.CostEstimate(flops=4 * n, transcendentals=n,
                           bytes_accessed=n * (in_size + out_size))

    # vmem_limit only when double-buffered in+out tiles exceed the v5e default.
    cp_kwargs = {}
    tile_bytes = block_rows * _LANES * (in_size + out_size)
    if 2 * tile_bytes > 12 * 1024 * 1024:
        cp_kwargs["vmem_limit_bytes"] = min(2 * tile_bytes + (2 << 20),
                                            56 * 1024 * 1024)

    # v7x (2 TensorCores/chip): core_parallel=True shards the row axis across
    # cores; plain "parallel" vs "arbitrary" is a near-zero delta otherwise.
    sem = pltpu.CORE_PARALLEL if core_parallel else "parallel"

    kernel = functools.partial(_kappa_kernel, rho=float(rho))
    return pl.pallas_call(
        kernel,
        out_shape=jax.ShapeDtypeStruct((rows, _LANES), out_dtype),
        grid_spec=pltpu.PrefetchScalarGridSpec(
            num_scalar_prefetch=0,
            grid=(grid,),
            in_specs=[
                pl.BlockSpec(memory_space=pltpu.MemorySpace.SMEM),     # scalar
                pl.BlockSpec((block_rows, _LANES), lambda i: (i, 0)),  # diff_X
            ],
            out_specs=pl.BlockSpec((block_rows, _LANES), lambda i: (i, 0)),
        ),
        compiler_params=pltpu.CompilerParams(
            dimension_semantics=(sem,), **cp_kwargs),
        cost_estimate=cost,
    )(scale2d, diff_slab)


def simple_bc_kappa(theta, diff_x, rho, *, block_rows=4096,
                    out_dtype=jnp.float32, force_pallas=False,
                    core_parallel=False):
    """kappa for a flat (E,) diff_X (convenience entry point).

    The intended hot path is prepare_diff_slab() once (init-time) + kappa_slab()
    per forward.  For an arbitrary flat vector the fused XLA elementwise
    expression is used unless force_pallas=True: pad + out[:e] would add two
    extra HBM passes around a bandwidth-bound kernel, and the pallas_call is a
    fusion barrier w.r.t. the kappa consumer.
    """
    if not force_pallas:
        eps = jax.nn.sigmoid(jnp.reshape(theta, ())) * 0.5
        return (rho * jax.nn.sigmoid(SHARPNESS * (eps - jnp.abs(diff_x)))
                ).astype(out_dtype)
    slab, e = prepare_diff_slab(diff_x, dtype=diff_x.dtype)
    out = kappa_slab(theta, slab, rho, block_rows=block_rows,
                     out_dtype=out_dtype, core_parallel=core_parallel)
    return out.reshape(-1)[:e]


if __name__ == "__main__":
    key = jax.random.PRNGKey(0)
    k_x, k_u, k_v, k_t, k_u2, k_v2, k_t2 = jax.random.split(key, 7)

    # small synthetic problem: T time steps, N nodes
    T, N = 8, 16
    X = jax.random.uniform(k_x, (T, N), dtype=jnp.float32)   # opinions in [0,1]

    # deterministic parameter init: theta = logit(2 * epsilon0)
    epsilon0, rho = 0.2, 0.8
    theta = jnp.array([jnp.log(2 * epsilon0) - jnp.log1p(-2 * epsilon0)],
                      dtype=jnp.float32)

    def make_diff(ku, kv, kt, E):
        # glue (done in __init__ of the torch module): diff_X = X[t, u] - X[t, v]
        u = jax.random.randint(ku, (E,), 0, N)
        v = jax.random.randint(kv, (E,), 0, N)
        t = jax.random.randint(kt, (E,), 0, T)
        return X[t, u] - X[t, v]

    def ref_kappa(diff):
        eps = jax.nn.sigmoid(theta[0]) * 0.5
        return rho * jax.nn.sigmoid(SHARPNESS * (eps - jnp.abs(diff)))

    # (1) slab hot path, multi-step grid with a PARTIAL final block
    #     (40 rows, 16-row tiles -> grid=3, last block writes only 8 rows)
    E1 = 40 * 128
    d1 = make_diff(k_u, k_v, k_t, E1)
    slab1, e1 = prepare_diff_slab(d1)                       # (40, 128), no pad
    out1 = jax.block_until_ready(kappa_slab(theta, slab1, rho, block_rows=16))
    assert out1.shape == (40, _LANES)
    assert jnp.allclose(out1.reshape(-1)[:e1], ref_kappa(d1), atol=1e-5, rtol=1e-5)

    # (2) slab hot path with the default (large) tile -> single full-extent block
    out2 = jax.block_until_ready(kappa_slab(theta, slab1, rho))
    assert jnp.allclose(out2.reshape(-1)[:e1], ref_kappa(d1), atol=1e-5, rtol=1e-5)

    # (3) bf16 slab I/O (half the HBM bytes); compute is f32 in-kernel
    slab1_bf, _ = prepare_diff_slab(d1, dtype=jnp.bfloat16)   # (48, 128) bf16
    out3 = jax.block_until_ready(kappa_slab(theta, slab1_bf, rho,
                                            out_dtype=jnp.float32))
    d1_bf = d1.astype(jnp.bfloat16).astype(jnp.float32)
    assert jnp.allclose(out3.reshape(-1)[:e1], ref_kappa(d1_bf),
                        atol=1e-5, rtol=1e-5)

    # (4) flat-vector convenience path, default dispatch = fused XLA expression
    E2 = 200
    d2 = make_diff(k_u2, k_v2, k_t2, E2)
    out4 = jax.block_until_ready(simple_bc_kappa(theta, d2, rho))
    assert out4.shape == (E2,)
    assert jnp.allclose(out4, ref_kappa(d2), atol=1e-5, rtol=1e-5)

    # (5) flat-vector convenience path forced through Pallas (prepare + slab)
    E3 = 50_000
    d3 = make_diff(k_v2, k_t2, k_u2, E3)
    out5 = jax.block_until_ready(simple_bc_kappa(theta, d3, rho,
                                                 force_pallas=True))
    assert out5.shape == (E3,)
    assert jnp.allclose(out5, ref_kappa(d3), atol=1e-5, rtol=1e-5)

    print("KERNEL_OK")
</pallas_src>

<mosaic_0001>
module attributes {stable_mosaic.version = 11 : i64} {
  func.func @_kappa_kernel(%arg0: i32, %arg1: memref<1x1xf32, #tpu.memory_space<smem>>, %arg2: memref<16x128xf32, #tpu.memory_space<vmem>>, %arg3: memref<16x128xf32, #tpu.memory_space<vmem>>) attributes {dimension_semantics = [#tpu.dimension_semantics<parallel>], iteration_bounds = array<i64: 3>, scalar_prefetch = 0 : i64, scratch_operands = 0 : i64, tpu.core_type = #tpu.core_type<tc>, window_params = [{transform_indices = @transform_0, window_bounds = array<i64: 1, 1>}, {transform_indices = @transform_1, window_bounds = array<i64: 16, 128>}, {transform_indices = @transform_2, window_bounds = array<i64: 16, 128>}]} {
    %c0 = arith.constant 0 : index
    %c0_0 = arith.constant 0 : index
    %0 = memref.load %arg1[%c0, %c0_0] : memref<1x1xf32, #tpu.memory_space<smem>>
    %c0_1 = arith.constant 0 : index
    %c0_2 = arith.constant 0 : index
    %1 = vector.load %arg2[%c0_1, %c0_2] : memref<16x128xf32, #tpu.memory_space<vmem>>, vector<16x128xf32>
    %2 = math.absf %1 : vector<16x128xf32>
    %cst = arith.constant 2.000000e+01 : f32
    %3 = vector.broadcast %cst : f32 to vector<16x128xf32>
    %4 = arith.mulf %3, %2 : vector<16x128xf32>
    %5 = vector.broadcast %0 : f32 to vector<16x128xf32>
    %6 = arith.subf %5, %4 : vector<16x128xf32>
    %7 = arith.negf %6 : vector<16x128xf32>
    %8 = math.exp %7 : vector<16x128xf32>
    %cst_3 = arith.constant 1.000000e+00 : f32
    %9 = vector.broadcast %cst_3 : f32 to vector<16x128xf32>
    %10 = arith.addf %9, %8 : vector<16x128xf32>
    %11 = arith.divf %9, %10 : vector<16x128xf32>
    %cst_4 = arith.constant 8.000000e-01 : f32
    %12 = vector.broadcast %cst_4 : f32 to vector<16x128xf32>
    %13 = arith.mulf %12, %11 : vector<16x128xf32>
    %c0_5 = arith.constant 0 : index
    %c0_6 = arith.constant 0 : index
    %14 = vector.load %arg3[%c0_5, %c0_6] : memref<16x128xf32, #tpu.memory_space<vmem>>, vector<16x128xf32>
    tpu.vector_store %arg3[%c0_5, %c0_6], %13 {strides = array<i32>} : memref<16x128xf32, #tpu.memory_space<vmem>>, vector<16x128xf32>,
    return
  }
  func.func @transform_0(%arg0: i32) -> (i32, i32) {
    %c0_i32 = arith.constant 0 : i32
    %c0_i32_0 = arith.constant 0 : i32
    %c0_i32_1 = arith.constant 0 : i32
    return %c0_i32, %c0_i32_0 : i32, i32
  }
  func.func @transform_1(%arg0: i32) -> (i32, i32) {
    %c0_i32 = arith.constant 0 : i32
    %c0_i32_0 = arith.constant 0 : i32
    return %arg0, %c0_i32 : i32, i32
  }
  func.func @transform_2(%arg0: i32) -> (i32, i32) {
    %c0_i32 = arith.constant 0 : i32
    %c0_i32_0 = arith.constant 0 : i32
    return %arg0, %c0_i32 : i32, i32
  }
}

</mosaic_0001>

<bundles_post_ra>
// kernel: tpu_custom_call.1
= control target key start
LH: loop header
LB: loop body
LE: loop exit
PB: predicated region body
PF: predicated region fallthrough
CT: control target
= control target key end

     0   :  { %s662_s0 = inlined_call_operand.<no memory space> [shape: f32[1,1], index: 0, kind: input, shape index: {}]   ;;  %s663_s1 = inlined_call_operand.hbm [shape: f32[40,128], index: 1, kind: input, shape index: {}]   ;;  %s664_s2 = inlined_call_operand.hbm [shape: f32[40,128], index: 2, kind: output, shape index: {}]  }
   0x1   :  { %7 = sst [smem:[#allocation2]] %s662_s0 }
   0x2   :  { %8 = vsyncpa [#allocation4], 0 }
   0x3   :  { %10 = vsyncpa [#allocation4 + $0x1], 0 }
   0x4   :  { %11 = vsyncpa [#allocation5], 0 }
   0x5   :  { %13 = vsyncpa [#allocation5 + $0x1], 0  ;;  %s495_s11 = smov 0   ;;  %s497_s12 = smov 0  }
   0x6   :  { %s499_s13 = smov 0   ;;  %s501_s14 = smov 0  }
   0x7 LB: > { %s516_s0 = sadd.s32 4294967295, %s469_s14   ;;  %s298_s15 = sadd.s32 4294967294, %s469_s14   ;;  %s469_s14 = sphi %s501_s14, %s672_s14   ;;  %s465_s13 = sphi %s499_s13, %s671_s13   ;;  %s461_s12 = sphi %s497_s12, %s670_s12   ;;  %s457_s11 = sphi %s495_s11, %s669_s11  }
   0x8   : > { %s520_s16 = sadd.s32 1, %s469_s14   ;;  %s47_s17 = sadd.s32 1, %s465_s13 }
   0x9   : > { %s44_s18 = ssub.s32 %s469_s14, %s520_s16  ;;  %p54_p0 = scmp.ne.s32.totalorder %s465_s13, %s461_s12 }
   0xa   : > { %p45_p1 = scmp.eq.s32.totalorder %s44_s18, 0  ;;  %p55_p2 = scmp.eq.s32.totalorder %s469_s14, 0 }
   0xb   : > { %p60_p3 = scmp.ne.s32.totalorder %s461_s12, %s457_s11  ;;  %p61_p4 = scmp.eq.s32.totalorder %s516_s0, 0 }
   0xc   : > { %s532_s19 = scalar_select %p45_p1, %s465_s13, %s47_s17  }
   0xd   : > { %p56_p5 = por %p55_p2, %p54_p0  ;;  %p534_p6 = por %p61_p4, %p60_p3 }
   0xe   : > { %p84_p7 = scmp.eq.s32.totalorder %s516_s0, 2  ;;  %p90_p8 = scmp.eq.s32.totalorder %s298_s15, 2 }
   0xf   : > { %p300_p11 = scmp.ge.s32.totalorder %s469_s14, 3 }
  0x10   : > { %p539_p9 = por %p84_p7, %p54_p0  ;;  %p543_p10 = por %p90_p8, %p60_p3 }
  0x11   : > { %109 = sbr.rel (%p300_p11) target bundleno = 59 (0x3b), region = 20 }
  0x12   : > { %s667_s22 = scalar_select %p543_p10, 1, 0 }
  0x18   : > { %112 = sbr.rel (!%p56_p5) target bundleno = 59 (0x3b), region = 24  ;;  %s113_s23 = sand.u32 (%p56_p5), 1, %s465_s13  }
  0x19   : > { %s302_s24 = sshll.u32 (%p56_p5), %s469_s14, 1  ;;  %s301_s25 = sshll.u32 (%p56_p5), %s113_s23, 4 }
  0x1a   : > { %s119_s26 = ssub.s32 (%p56_p5), 5, %s302_s24  ;;  %s553_s29 = scalar_lea.sflag (%p56_p5), [#allocation4], %s113_s23 }
  0x1b   : > { %p120_p12 = scmp.lt.s32.totalorder (%p56_p5), %s119_s26, 2  ;;  %s117_s30 = scalar_lea.vmem (%p56_p5), [#allocation3], %s301_s25 }
  0x1f   : > { %s674_s26 = smov (!%p120_p12, %s119_s26), 2 }
  0x20   : > { %s550_s27 = sshll.u32 %s674_s26, 7 }
  0x21   : > { %s124_s28 = ssub.s32 256, %s550_s27 }
  0x22   : > { %125 = vsyncadd %s553_s29, %s124_s28  ;;  %p304_p13 = scmp.ne.s32.totalorder %s550_s27, 0  ;;  %s322_s3 = sshll.u32 %s469_s14, 8 }
  0x23   : > { %s561_s6 = scalar_lea.hbm %s663_s1, %s322_s3  ;;  %s130_s7 = sshll.u32 %s117_s30, 4  ;;  %s563_s7 = int_to_ptr.vmem [resolvable:$true] %s130_s7 }
  0x24   : > { %s375_s8 = scalar_lea.hbm %s561_s6, %s550_s27  ;;  %s379_s15 = scalar_lea.hbm %s663_s1, 640 }
  0x25   : > { %p376_p0 = scmp.ne.s32.totalorder %s561_s6, %s375_s8  ;;  %p380_p3 = scmp.lt.u32.totalorder %s561_s6, %s663_s1 }
  0x26   : > { %p381_p4 = scmp.lt.u32.totalorder %s379_s15, %s375_s8  ;;  %p383_p7 = scmp.lt.u32.totalorder %s375_s8, %s561_s6 }
  0x27   : > { %p377_p1 = pnand %p376_p0, %p304_p13 }
  0x28   : > { %p382_p5 = por %p381_p4, %p380_p3 }
  0x29   : > { %p378_p2 = pneg %p377_p1 }
  0x2a   : > { %p384_p8 = por %p383_p7, %p382_p5 }
  0x2c   : > { %p385_p11 = pnand %p384_p8, %p378_p2 }
  0x2e   : > { %388 = shalt.err (!%p385_p11)
}
  0x2f   : > { %s389_s23 = scalar_lea.vmem %s563_s7, %s550_s27  ;;  %s471_s24 = smov [#allocation3]  }
  0x30   : > { %p390_p12 = scmp.ne.s32.totalorder %s563_s7, %s389_s23  ;;  %s393_s25 = sshll.u32 %s471_s24, 4  ;;  %s394_s25 = int_to_ptr.vmem [resolvable:$false] %s393_s25 }
  0x31   : > { %s395_s26 = scalar_lea.vmem %s394_s25, 512  ;;  %p396_p10 = scmp.lt.s32.totalorder %s563_s7, %s394_s25 }
  0x32   : > { %p391_p0 = pnand %p390_p12, %p304_p13  ;;  %p397_p3 = scmp.lt.s32.totalorder %s395_s26, %s389_s23 }
  0x34   : > { %p392_p1 = pneg %p391_p0  ;;  %p398_p4 = por %p397_p3, %p396_p10 }
  0x36   : > { %p399_p5 = pnand %p398_p4, %p392_p1 }
  0x38   : > { %402 = shalt.err (!%p399_p5)
}
  0x39   : > { %s472_s28 = smov 128   ;;  %s473_s30 = smov 8  }
  0x3a   : > { %136 = dma.hbm_to_vmem [thread:$0]  (%p304_p13), %s561_s6, %s550_s27, %s563_s7, %s553_s29, %s472_s28, %s472_s28, %s473_s30  }
  0x3b PF: > { %p308_p2 = scmp.ge.s32.totalorder %s469_s14, 1  ;;  %p138_p7 = scmp.lt.s32.totalorder %s469_s14, 4 }
  0x3d   : > { %p139_p8 = pnand %p308_p2, %p138_p7 }
  0x3e   : > { %s593_s3 = sand.u32 (!%p139_p8), 1, %s461_s12  }
  0x3f   : > { %142 = sbr.rel (%p139_p8) target bundleno = 138 (0x8a), region = 28  ;;  %s309_s4 = sshll.u32 (!%p139_p8), %s593_s3, 4 }
  0x40   : > { %s145_s5 = scalar_lea.sflag (!%p139_p8), [#allocation4], %s593_s3  ;;  %s148_s8 = scalar_lea.vmem (!%p139_p8), [#allocation3], %s309_s4 }
  0x46   : > { %448 = dma.done.wait (%p534_p6), %s145_s5, 256  }
  0x47   : > { %450 = vsyncadd (%p534_p6), %s145_s5, 4294967040  ;;  %s179_s27 = sld [smem:[#allocation2]]  ;;  %v180_v0 = vld [vmem:[%s148_s8] sm:$0xff]  ;;  %v181_v1 = vld [vmem:[%s148_s8 + $0x8] sm:$0xff]  ;;  %s168_s20 = scalar_lea.vmem [#allocation6], %s309_s4 }
  0x48   : > { %v182_v2 = vand.u32 2147483647, %v180_v0  ;;  %v183_v3 = vand.u32 2147483647, %v181_v1  ;;  %s206_s29 = scalar_lea.sflag [#allocation5], %s593_s3  ;;  %s314_s6 = sshll.u32 (%p539_p9), %s516_s0, 1 }
  0x49   : > { %s214_s7 = ssub.s32 (%p539_p9), 5, %s314_s6 }
  0x4a   : > { %v184_v5 = vmul.f32 20.0, %v182_v2  ;;  %v185_v6 = vmul.f32 20.0, %v183_v3  ;;  %p215_p6 = scmp.lt.s32.totalorder (%p539_p9), %s214_s7, 2 }
  0x4d   : > { %v186_v4 = vstv %s179_s27 }
  0x4e   : > { %v187_v7 = vsub.f32 %v186_v4, %v184_v5  ;;  %v188_v8 = vsub.f32 %v186_v4, %v185_v6 }
  0x50   : > { %v311_v9 = vmul.f32 -1.442695, %v187_v7  ;;  %v312_v10 = vmul.f32 -1.442695, %v188_v8 }
  0x52   : > { %367 = vpow2.f32 %v311_v9 }
  0x53   : > { %369 = vpow2.f32 %v312_v10 }
  0x5c   : > { %v368_v11 = vpop.eup %367 }
  0x5d   : > { %v370_v12 = vpop.eup %369  ;;  %v195_v13 = vadd.f32 1.0, %v368_v11 }
  0x5e   : > { %v196_v14 = vadd.f32 1.0, %v370_v12 }
  0x5f   : > { %371 = vrcp.f32 %v195_v13 }
  0x60   : > { %373 = vrcp.f32 %v196_v14 }
  0x67   : > { %212 = sbr.rel (!%p539_p9) target bundleno = 138 (0x8a), region = 36 }
  0x69   : > { %v372_v15 = vpop.eup %371 }
  0x6a   : > { %v374_v16 = vpop.eup %373  ;;  %v201_v17 = vmul.f32 0.8, %v372_v15 }
  0x6b   : > { %v202_v18 = vmul.f32 0.8, %v374_v16 }
  0x6c   : > { %203 = vst [vmem:[%s168_s20] sm:$0xff] %v201_v17 }
  0x6d   : > { %204 = vst [vmem:[%s168_s20 + $0x8] sm:$0xff] %v202_v18 }
  0x6e   : > { %s676_s7 = smov (!%p215_p6, %s214_s7), 2 }
  0x6f   : > { %s605_s9 = sshll.u32 %s676_s7, 7 }
  0x70   : > { %s219_s10 = ssub.s32 256, %s605_s9 }
  0x71   : > { %220 = vsyncadd %s206_s29, %s219_s10  ;;  %p316_p10 = scmp.ne.s32.totalorder %s605_s9, 0  ;;  %s323_s15 = sshll.u32 %s516_s0, 8 }
  0x72   : > { %s615_s18 = scalar_lea.hbm %s664_s2, %s323_s15  ;;  %s225_s23 = sshll.u32 %s168_s20, 4  ;;  %s617_s23 = int_to_ptr.vmem [resolvable:$true] %s225_s23 }
  0x73   : > { %s403_s24 = scalar_lea.vmem %s617_s23, %s605_s9  ;;  %s474_s25 = smov [#allocation6]  }
  0x74   : > { %p404_p9 = scmp.ne.s32.totalorder %s617_s23, %s403_s24  ;;  %s407_s26 = sshll.u32 %s474_s25, 4  ;;  %s408_s26 = int_to_ptr.vmem [resolvable:$false] %s407_s26 }
  0x75   : > { %s409_s0 = scalar_lea.vmem %s408_s26, 512  ;;  %p410_p12 = scmp.lt.s32.totalorder %s617_s23, %s408_s26 }
  0x76   : > { %p405_p13 = pnand %p404_p9, %p316_p10  ;;  %p411_p0 = scmp.lt.s32.totalorder %s409_s0, %s403_s24 }
  0x78   : > { %p406_p11 = pneg %p405_p13  ;;  %p412_p1 = por %p411_p0, %p410_p12 }
  0x7a   : > { %p413_p3 = pnand %p412_p1, %p406_p11 }
  0x7c   : > { %416 = shalt.err (!%p413_p3)
}
  0x7d   : > { %s417_s28 = scalar_lea.hbm %s615_s18, %s605_s9  ;;  %s421_s5 = scalar_lea.hbm %s664_s2, 640 }
  0x7e   : > { %p418_p4 = scmp.ne.s32.totalorder %s615_s18, %s417_s28  ;;  %p422_p7 = scmp.lt.u32.totalorder %s615_s18, %s664_s2 }
  0x7f   : > { %p423_p8 = scmp.lt.u32.totalorder %s421_s5, %s417_s28  ;;  %p425_p9 = scmp.lt.u32.totalorder %s417_s28, %s615_s18 }
  0x80   : > { %p419_p5 = pnand %p418_p4, %p316_p10 }
  0x81   : > { %p424_p6 = por %p423_p8, %p422_p7 }
  0x82   : > { %p420_p2 = pneg %p419_p5 }
  0x83   : > { %p426_p13 = por %p425_p9, %p424_p6 }
  0x85   : > { %p427_p11 = pnand %p426_p13, %p420_p2 }
  0x87   : > { %430 = shalt.err (!%p427_p11)
}
  0x88   : > { %s475_s20 = smov 128   ;;  %s476_s6 = smov 8  }
  0x89   : > { %231 = dma.vmem_to_hbm [thread:$0]  (%p316_p10), %s617_s23, %s605_s9, %s615_s18, %s206_s29, %s475_s20, %s475_s20, %s476_s6  }
  0x8a PF: > { %p330_p12 = scmp.ge.s32.totalorder %s469_s14, 2  ;;  %s240_s7 = sand.u32 1, %s457_s11  }
  0x8b   : > { %p668_p0 = scmp.ne.s32.totalorder %s667_s22, 0  ;;  %s241_s10 = scalar_lea.sflag [#allocation5], %s240_s7 }
  0x8d   : > { %p327_p1 = pnand %p330_p12, %p668_p0 }
  0x8f   : > { %452 = dma.done.wait (!%p327_p1), %s241_s10, 256  }
  0x90   : > { %454 = vsyncadd (!%p327_p1), %s241_s10, 4294967040  ;;  %p16_p3 = scmp.ge.s32.totalorder %s520_s16, 5   ;;  %s669_s11 = smov %s461_s12 }
  0x91   : > { %s670_s12 = smov %s465_s13  ;;  %s671_s13 = smov %s532_s19 }
  0x92   : > { %s672_s14 = smov %s520_s16  ;;  %18 = sbr.rel (!%p16_p3) target bundleno = 7 (0x7), region = 73 }
  0x99   :  { %246 = vsyncpa [#allocation4], 1 }
  0x9a   :  { %248 = vsyncpa [#allocation4 + $0x1], 1 }
  0x9b   :  { %249 = vsyncpa [#allocation5], 1 }
  0x9c   :  { %251 = vsyncpa [#allocation5 + $0x1], 1 }

</bundles_post_ra>
